<compile_context>
chip_gen: v6e
topology: v6e:2x2x1
jax: 0.10.0
libtpu: 0.0.40
codegen_flags: <defaults>
</compile_context>

<pallas_src>
import jax
import jax.numpy as jnp
from jax.experimental import pallas as pl
from jax.experimental.pallas import tpu as pltpu


# Padded feature sizes (all multiples of 128 lanes).
K_PAD = 896      # 784 -> 896  (7 * 128) contraction dim of layer 1
H1 = 128         # layer-1 width (already lane aligned)
H2_PAD = 128     # 64  -> 128
OUT_PAD = 128    # 10  -> 128
MAX_TB = 256     # batch tile (M) rows per grid step


def _round_up(n, m):
    return ((n + m - 1) // m) * m


def mlp_kernel(x_ref, w1_ref, b1_ref, w2_ref, b2_ref, w3_ref, b3_ref, o_ref):
    # Whole 3-layer chain fused: h1/h2 never leave vregs/VMEM.
    x = x_ref[...]                                                    # (TB, 896) bf16
    h1 = jnp.dot(x, w1_ref[...], preferred_element_type=jnp.float32)  # (TB, 128) f32
    h1 = jnp.maximum(h1 + b1_ref[...], 0.0).astype(jnp.bfloat16)
    h2 = jnp.dot(h1, w2_ref[...], preferred_element_type=jnp.float32)  # (TB, 128) f32
    h2 = jnp.maximum(h2 + b2_ref[...], 0.0).astype(jnp.bfloat16)
    h3 = jnp.dot(h2, w3_ref[...], preferred_element_type=jnp.float32)  # (TB, 128) f32
    o_ref[...] = (h3 + b3_ref[...]).astype(o_ref.dtype)


def prepare_params(params):
    """Zero-pad weights/biases to lane-aligned shapes and cast weights to bf16."""
    w1, b1, w2, b2, w3, b3 = params
    # w1: (784, 128) -> (896, 128); padded rows are zero so padded x cols are inert.
    w1p = jnp.zeros((K_PAD, H1), jnp.bfloat16).at[:784, :].set(w1.astype(jnp.bfloat16))
    b1p = b1.astype(jnp.float32)                                   # (1, 128)
    # w2: (128, 64) -> (128, 128); b2: (1, 64) -> (1, 128)
    w2p = jnp.zeros((H1, H2_PAD), jnp.bfloat16).at[:, :64].set(w2.astype(jnp.bfloat16))
    b2p = jnp.zeros((1, H2_PAD), jnp.float32).at[:, :64].set(b2.astype(jnp.float32))
    # w3: (64, 10) -> (128, 128); b3: (1, 10) -> (1, 128)
    w3p = jnp.zeros((H2_PAD, OUT_PAD), jnp.bfloat16).at[:64, :10].set(w3.astype(jnp.bfloat16))
    b3p = jnp.zeros((1, OUT_PAD), jnp.float32).at[:, :10].set(b3.astype(jnp.float32))
    return (w1p, b1p, w2p, b2p, w3p, b3p)


def net_forward(x_nchw, prepared_params):
    w1p, b1p, w2p, b2p, w3p, b3p = prepared_params
    B = x_nchw.shape[0]
    x = x_nchw.reshape(B, -1)                       # torch.flatten(x, 1) -> (B, 784)
    assert x.shape[1] == 784, f"expected 784 features, got {x.shape[1]}"

    # Batch tile: multiple of 16 (bf16 sublane packing), capped at MAX_TB.
    tb = min(MAX_TB, _round_up(B, 16))
    b_pad = _round_up(B, tb)
    nb = b_pad // tb

    # Pad batch rows and contraction dim (784 -> 896) with zeros, cast to bf16.
    xp = jnp.zeros((b_pad, K_PAD), jnp.bfloat16)
    xp = xp.at[:B, :784].set(x.astype(jnp.bfloat16))

    out_padded = pl.pallas_call(
        mlp_kernel,
        out_shape=jax.ShapeDtypeStruct((b_pad, OUT_PAD), jnp.float32),
        grid=(nb,),
        in_specs=[
            pl.BlockSpec((tb, K_PAD), lambda i: (i, 0)),        # x tile, streamed
            pl.BlockSpec((K_PAD, H1), lambda i: (0, 0)),        # w1, resident
            pl.BlockSpec((1, H1), lambda i: (0, 0)),            # b1
            pl.BlockSpec((H1, H2_PAD), lambda i: (0, 0)),       # w2
            pl.BlockSpec((1, H2_PAD), lambda i: (0, 0)),        # b2
            pl.BlockSpec((H2_PAD, OUT_PAD), lambda i: (0, 0)),  # w3
            pl.BlockSpec((1, OUT_PAD), lambda i: (0, 0)),       # b3
        ],
        out_specs=pl.BlockSpec((tb, OUT_PAD), lambda i: (i, 0)),
        compiler_params=pltpu.CompilerParams(
            dimension_semantics=("parallel",),
        ),
    )(xp, w1p, b1p, w2p, b2p, w3p, b3p)

    # Drop batch padding and padded output lanes -> (B, 10).
    return out_padded[:B, :10]


def init_params(key):
    # Deterministic init mimicking nn.Linear default: U(-1/sqrt(fan_in), +1/sqrt(fan_in)).
    # Weights stored as (in_features, out_features) so forward is y = x @ W + b.
    def linear(key, fan_in, fan_out):
        kw, kb = jax.random.split(key)
        bound = 1.0 / jnp.sqrt(fan_in)
        w = jax.random.uniform(kw, (fan_in, fan_out), jnp.float32, -bound, bound)
        b = jax.random.uniform(kb, (1, fan_out), jnp.float32, -bound, bound)
        return w, b

    k1, k2, k3 = jax.random.split(key, 3)
    w1, b1 = linear(k1, 784, 128)
    w2, b2 = linear(k2, 128, 64)
    w3, b3 = linear(k3, 64, 10)
    return (w1, b1, w2, b2, w3, b3)


def reference_forward(x_nchw, params):
    w1, b1, w2, b2, w3, b3 = params
    x = x_nchw.reshape(x_nchw.shape[0], -1)
    h1 = jnp.maximum(x @ w1 + b1, 0.0)
    h2 = jnp.maximum(h1 @ w2 + b2, 0.0)
    return h2 @ w3 + b3


if __name__ == "__main__":
    key = jax.random.PRNGKey(0)
    kx, kp = jax.random.split(key)

    # Small MNIST-like batch: (B=2, C=1, H=28, W=28) -> 784 features.
    x = jax.random.normal(kx, (2, 1, 28, 28), jnp.float32)
    params = init_params(kp)
    prepared = prepare_params(params)

    out = net_forward(x, prepared)
    out = jax.block_until_ready(out)

    ref_f32 = reference_forward(x, params)
    assert out.shape == (2, 10), out.shape
    # Kernel uses bf16 inputs/weights with f32 accumulation; compare against
    # the f32 reference with a tolerance that covers bf16 rounding.
    assert jnp.allclose(out, ref_f32, atol=5e-2, rtol=5e-2), "mismatch vs JAX reference"

    print("KERNEL_OK")
</pallas_src>

<mosaic_0001>
module attributes {stable_mosaic.version = 11 : i64} {
  func.func @mlp_kernel(%arg0: i32, %arg1: memref<16x896xbf16, #tpu.memory_space<vmem>>, %arg2: memref<896x128xbf16, #tpu.memory_space<vmem>>, %arg3: memref<1x128xf32, #tpu.memory_space<vmem>>, %arg4: memref<128x128xbf16, #tpu.memory_space<vmem>>, %arg5: memref<1x128xf32, #tpu.memory_space<vmem>>, %arg6: memref<128x128xbf16, #tpu.memory_space<vmem>>, %arg7: memref<1x128xf32, #tpu.memory_space<vmem>>, %arg8: memref<16x128xf32, #tpu.memory_space<vmem>>) attributes {dimension_semantics = [#tpu.dimension_semantics<parallel>], iteration_bounds = array<i64: 1>, scalar_prefetch = 0 : i64, scratch_operands = 0 : i64, tpu.core_type = #tpu.core_type<tc>, window_params = [{transform_indices = @transform_0, window_bounds = array<i64: 16, 896>}, {pipeline_mode = #tpu.pipeline_mode<synchronous>, transform_indices = @transform_1, window_bounds = array<i64: 896, 128>}, {pipeline_mode = #tpu.pipeline_mode<synchronous>, transform_indices = @transform_2, window_bounds = array<i64: 1, 128>}, {pipeline_mode = #tpu.pipeline_mode<synchronous>, transform_indices = @transform_3, window_bounds = array<i64: 128, 128>}, {pipeline_mode = #tpu.pipeline_mode<synchronous>, transform_indices = @transform_4, window_bounds = array<i64: 1, 128>}, {pipeline_mode = #tpu.pipeline_mode<synchronous>, transform_indices = @transform_5, window_bounds = array<i64: 128, 128>}, {pipeline_mode = #tpu.pipeline_mode<synchronous>, transform_indices = @transform_6, window_bounds = array<i64: 1, 128>}, {transform_indices = @transform_7, window_bounds = array<i64: 16, 128>}]} {
    %c0 = arith.constant 0 : index
    %c0_0 = arith.constant 0 : index
    %0 = vector.load %arg1[%c0, %c0_0] : memref<16x896xbf16, #tpu.memory_space<vmem>>, vector<16x896xbf16>
    %c0_1 = arith.constant 0 : index
    %c0_2 = arith.constant 0 : index
    %1 = vector.load %arg2[%c0_1, %c0_2] : memref<896x128xbf16, #tpu.memory_space<vmem>>, vector<896x128xbf16>
    %cst = arith.constant dense<0.000000e+00> : vector<16x128xf32>
    %2 = tpu.matmul %0, %1, %cst {dimension_numbers = #tpu.dot_dimension_numbers<[1], [0], [0], [1], [0, 0, 1, 1], [], []>} : vector<16x896xbf16>, vector<896x128xbf16>, vector<16x128xf32> -> vector<16x128xf32>
    %c0_3 = arith.constant 0 : index
    %c0_4 = arith.constant 0 : index
    %3 = vector.load %arg3[%c0_3, %c0_4] : memref<1x128xf32, #tpu.memory_space<vmem>>, vector<1x128xf32>
    %4 = vector.broadcast %3 : vector<1x128xf32> to vector<16x128xf32>
    %5 = arith.addf %2, %4 : vector<16x128xf32>
    %cst_5 = arith.constant 0.000000e+00 : f32
    %6 = vector.broadcast %cst_5 : f32 to vector<16x128xf32>
    %7 = arith.maximumf %5, %6 : vector<16x128xf32>
    %8 = arith.truncf %7 : vector<16x128xf32> to vector<16x128xbf16>
    %c0_6 = arith.constant 0 : index
    %c0_7 = arith.constant 0 : index
    %9 = vector.load %arg4[%c0_6, %c0_7] : memref<128x128xbf16, #tpu.memory_space<vmem>>, vector<128x128xbf16>
    %cst_8 = arith.constant dense<0.000000e+00> : vector<16x128xf32>
    %10 = tpu.matmul %8, %9, %cst_8 {dimension_numbers = #tpu.dot_dimension_numbers<[1], [0], [0], [1], [0, 0, 1, 1], [], []>} : vector<16x128xbf16>, vector<128x128xbf16>, vector<16x128xf32> -> vector<16x128xf32>
    %c0_9 = arith.constant 0 : index
    %c0_10 = arith.constant 0 : index
    %11 = vector.load %arg5[%c0_9, %c0_10] : memref<1x128xf32, #tpu.memory_space<vmem>>, vector<1x128xf32>
    %12 = vector.broadcast %11 : vector<1x128xf32> to vector<16x128xf32>
    %13 = arith.addf %10, %12 : vector<16x128xf32>
    %cst_11 = arith.constant 0.000000e+00 : f32
    %14 = vector.broadcast %cst_11 : f32 to vector<16x128xf32>
    %15 = arith.maximumf %13, %14 : vector<16x128xf32>
    %16 = arith.truncf %15 : vector<16x128xf32> to vector<16x128xbf16>
    %c0_12 = arith.constant 0 : index
    %c0_13 = arith.constant 0 : index
    %17 = vector.load %arg6[%c0_12, %c0_13] : memref<128x128xbf16, #tpu.memory_space<vmem>>, vector<128x128xbf16>
    %cst_14 = arith.constant dense<0.000000e+00> : vector<16x128xf32>
    %18 = tpu.matmul %16, %17, %cst_14 {dimension_numbers = #tpu.dot_dimension_numbers<[1], [0], [0], [1], [0, 0, 1, 1], [], []>} : vector<16x128xbf16>, vector<128x128xbf16>, vector<16x128xf32> -> vector<16x128xf32>
    %c0_15 = arith.constant 0 : index
    %c0_16 = arith.constant 0 : index
    %19 = vector.load %arg7[%c0_15, %c0_16] : memref<1x128xf32, #tpu.memory_space<vmem>>, vector<1x128xf32>
    %20 = vector.broadcast %19 : vector<1x128xf32> to vector<16x128xf32>
    %21 = arith.addf %18, %20 : vector<16x128xf32>
    %c0_17 = arith.constant 0 : index
    %c0_18 = arith.constant 0 : index
    %22 = vector.load %arg8[%c0_17, %c0_18] : memref<16x128xf32, #tpu.memory_space<vmem>>, vector<16x128xf32>
    tpu.vector_store %arg8[%c0_17, %c0_18], %21 {strides = array<i32>} : memref<16x128xf32, #tpu.memory_space<vmem>>, vector<16x128xf32>,
    return
  }
  func.func @transform_0(%arg0: i32) -> (i32, i32) {
    %c0_i32 = arith.constant 0 : i32
    %c0_i32_0 = arith.constant 0 : i32
    return %arg0, %c0_i32 : i32, i32
  }
  func.func @transform_1(%arg0: i32) -> (i32, i32) {
    %c0_i32 = arith.constant 0 : i32
    %c0_i32_0 = arith.constant 0 : i32
    %c0_i32_1 = arith.constant 0 : i32
    return %c0_i32, %c0_i32_0 : i32, i32
  }
  func.func @transform_2(%arg0: i32) -> (i32, i32) {
    %c0_i32 = arith.constant 0 : i32
    %c0_i32_0 = arith.constant 0 : i32
    %c0_i32_1 = arith.constant 0 : i32
    return %c0_i32, %c0_i32_0 : i32, i32
  }
  func.func @transform_3(%arg0: i32) -> (i32, i32) {
    %c0_i32 = arith.constant 0 : i32
    %c0_i32_0 = arith.constant 0 : i32
    %c0_i32_1 = arith.constant 0 : i32
    return %c0_i32, %c0_i32_0 : i32, i32
  }
  func.func @transform_4(%arg0: i32) -> (i32, i32) {
    %c0_i32 = arith.constant 0 : i32
    %c0_i32_0 = arith.constant 0 : i32
    %c0_i32_1 = arith.constant 0 : i32
    return %c0_i32, %c0_i32_0 : i32, i32
  }
  func.func @transform_5(%arg0: i32) -> (i32, i32) {
    %c0_i32 = arith.constant 0 : i32
    %c0_i32_0 = arith.constant 0 : i32
    %c0_i32_1 = arith.constant 0 : i32
    return %c0_i32, %c0_i32_0 : i32, i32
  }
  func.func @transform_6(%arg0: i32) -> (i32, i32) {
    %c0_i32 = arith.constant 0 : i32
    %c0_i32_0 = arith.constant 0 : i32
    %c0_i32_1 = arith.constant 0 : i32
    return %c0_i32, %c0_i32_0 : i32, i32
  }
  func.func @transform_7(%arg0: i32) -> (i32, i32) {
    %c0_i32 = arith.constant 0 : i32
    %c0_i32_0 = arith.constant 0 : i32
    return %arg0, %c0_i32 : i32, i32
  }
}

</mosaic_0001>

<bundles_post_ra>
// kernel: tpu_custom_call.1
= control target key start
LH: loop header
LB: loop body
LE: loop exit
PB: predicated region body
PF: predicated region fallthrough
CT: control target
= control target key end

     0   :  { %12 = vsyncpa [#allocation3], 0  ;;  %s1551_s0 = inlined_call_operand.hbm [shape: bf16[16,896], index: 0, kind: input, shape index: {}]   ;;  %s1552_s1 = inlined_call_operand.hbm [shape: bf16[896,128], index: 1, kind: input, shape index: {}]   ;;  %s1553_s2 = inlined_call_operand.vmem [shape: f32[1,128], index: 2, kind: input, shape index: {}]   ;;  %s1554_s3 = inlined_call_operand.hbm [shape: bf16[128,128], index: 3, kind: input, shape index: {}]   ;;  %s1555_s4 = inlined_call_operand.vmem [shape: f32[1,128], index: 4, kind: input, shape index: {}]   ;;  %s1556_s5 = inlined_call_operand.hbm [shape: bf16[128,128], index: 5, kind: input, shape index: {}]   ;;  %s1557_s6 = inlined_call_operand.vmem [shape: f32[1,128], index: 6, kind: input, shape index: {}]   ;;  %s1558_s7 = inlined_call_operand.hbm [shape: f32[16,128], index: 7, kind: output, shape index: {}]  }
   0x1   :  { %13 = vsyncpa [#allocation6], 0 }
   0x2   :  { %14 = vsyncpa [#allocation9], 0 }
   0x3   :  { %15 = vsyncpa [#allocation4], 0  ;;  %s1435_s24 = smov [#allocation5]  }
   0x4   :  { %s33_s25 = sshll.u32 %s1435_s24, 4  ;;  %s34_s25 = int_to_ptr.vmem [resolvable:$true] %s33_s25 }
   0x5   :  { %s1335_s26 = scalar_lea.vmem %s34_s25, 7168  ;;  %p1340_p1 = scmp.lt.s32.totalorder %s34_s25, %s34_s25 }
   0x6   :  { %p1336_p0 = scmp.ne.s32.totalorder %s34_s25, %s1335_s26  ;;  %p1341_p2 = scmp.lt.s32.totalorder %s1335_s26, %s1335_s26 }
   0x8   :  { %p1342_p3 = por %p1341_p2, %p1340_p1 }
   0xa   :  { %p1343_p4 = pnand %p1342_p3, %p1336_p0 }
   0xc   :  { %1346 = shalt.err (!%p1343_p4)
}
   0xd   :  { %s1436_s27 = smov 64   ;;  %s1437_s28 = smov 4  }
   0xe   :  { %39 = dma.hbm_to_vmem [thread:$0]  %s1552_s1, 7168, %s34_s25, [#allocation6], %s1436_s27, %s1436_s27, %s1437_s28  }
   0xf   :  { %s1438_s8 = smov [#allocation2]  }
  0x10   :  { %s21_s9 = sshll.u32 %s1438_s8, 4  ;;  %s22_s9 = int_to_ptr.vmem [resolvable:$true] %s21_s9 }
  0x11   :  { %s1355_s10 = scalar_lea.vmem %s22_s9, 896  ;;  %p1360_p6 = scmp.lt.s32.totalorder %s22_s9, %s22_s9 }
  0x12   :  { %p1356_p5 = scmp.ne.s32.totalorder %s22_s9, %s1355_s10  ;;  %p1361_p7 = scmp.lt.s32.totalorder %s1355_s10, %s1355_s10 }
  0x14   :  { %p1362_p8 = por %p1361_p7, %p1360_p6 }
  0x16   :  { %p1363_p9 = pnand %p1362_p8, %p1356_p5 }
  0x18   :  { %1366 = shalt.err (!%p1363_p9)
}
  0x19   :  { %s1439_s11 = smov 448   ;;  %s1440_s12 = smov 28  }
  0x1a   :  { %27 = dma.hbm_to_vmem [thread:$0]  %s1551_s0, 896, %s22_s9, [#allocation3], %s1439_s11, %s1439_s11, %s1440_s12  }
  0x1b   :  { %s1441_s15 = smov [#allocation7]   ;;  %s1442_s17 = smov [#allocation8]  }
  0x1c   :  { %s47_s16 = sshll.u32 %s1441_s15, 4  ;;  %s61_s1 = sshll.u32 %s1442_s17, 4  ;;  %s48_s16 = int_to_ptr.vmem [resolvable:$true] %s47_s16  ;;  %s62_s1 = int_to_ptr.vmem [resolvable:$true] %s61_s1 }
  0x1d   :  { %s1375_s18 = scalar_lea.vmem %s48_s16, 1024  ;;  %p1380_p11 = scmp.lt.s32.totalorder %s48_s16, %s48_s16 }
  0x1e   :  { %p1376_p10 = scmp.ne.s32.totalorder %s48_s16, %s1375_s18  ;;  %p1381_p12 = scmp.lt.s32.totalorder %s1375_s18, %s1375_s18 }
  0x20   :  { %p1382_p13 = por %p1381_p12, %p1380_p11 }
  0x22   :  { %p1383_p0 = pnand %p1382_p13, %p1376_p10 }
  0x24   :  { %1386 = shalt.err (!%p1383_p0)
}
  0x25   :  { %53 = dma.hbm_to_vmem [thread:$0]  %s1554_s3, 1024, %s48_s16, [#allocation6], %s1436_s27, %s1436_s27, %s1437_s28  }
  0x26   :  { %s1395_s0 = scalar_lea.vmem %s62_s1, 1024  ;;  %p1400_p2 = scmp.lt.s32.totalorder %s62_s1, %s62_s1 }
  0x27   :  { %p1396_p1 = scmp.ne.s32.totalorder %s62_s1, %s1395_s0  ;;  %p1401_p3 = scmp.lt.s32.totalorder %s1395_s0, %s1395_s0 }
  0x29   :  { %p1402_p4 = por %p1401_p3, %p1400_p2 }
  0x2b   :  { %p1403_p5 = pnand %p1402_p4, %p1396_p1 }
  0x2d   :  { %1406 = shalt.err (!%p1403_p5)
}
  0x2e   :  { %67 = dma.hbm_to_vmem [thread:$0]  %s1556_s5, 1024, %s62_s1, [#allocation9], %s1436_s27, %s1436_s27, %s1437_s28  }
  0x2f   :  { %1427 = dma.done.wait [#allocation3], 896  }
  0x30   :  { %1428 = vsyncadd [#allocation3], 4294966400 }
  0x31   :  { %1429 = dma.done.wait [#allocation6], 8192  }
  0x32   :  { %1430 = vsyncadd [#allocation6], 4294959104 }
  0x33   :  { %1431 = dma.done.wait [#allocation9], 1024  }
  0x34   :  { %1432 = vsyncadd [#allocation9], 4294966272  ;;  %v1245_v0 = vld [vmem:[#allocation5 + $0x78] sm:$0xff]   ;;  %v1249_v4 = vld [vmem:[#allocation5 + $0x70] sm:$0xff]   ;;  %v1443_v36 = vmov 0.0   ;;  %vm1444_vm0 = vmmov 0  }
  0x35   :  { %v1246_v1 = vld [vmem:[#allocation5 + $0xf8] sm:$0xff]   ;;  %1079 = vmatprep.subr.bf16.mxu0 %v1245_v0  ;;  %v1250_v5 = vld [vmem:[#allocation5 + $0xf0] sm:$0xff]   ;;  %v1253_v8 = vld [vmem:[#allocation5 + $0x68] sm:$0xff]   ;;  %s1445_s26 = smov [#allocation10]  }
  0x36   :  { %v1247_v2 = vld [vmem:[#allocation5 + $0x38] sm:$0xff]   ;;  %1101 = vmatprep.subr.bf16.mxu1 %v1246_v1  ;;  %v1251_v6 = vld [vmem:[#allocation5 + $0x30] sm:$0xff]   ;;  %v1254_v9 = vld [vmem:[#allocation5 + $0xe8] sm:$0xff]   ;;  %s983_s27 = sshll.u32 %s1445_s26, 4  ;;  %s984_s27 = int_to_ptr.vmem [resolvable:$true] %s983_s27 }
  0x37   :  { %v1248_v3 = vld [vmem:[#allocation5 + $0xb8] sm:$0xff]   ;;  %1080 = vmatpush3.bf16.msra.mxu0 %v1247_v2  ;;  %v1252_v7 = vld [vmem:[#allocation5 + $0xb0] sm:$0xff]   ;;  %v1255_v10 = vld [vmem:[#allocation5 + $0x28] sm:$0xff]   ;;  %p1412_p7 = scmp.lt.s32.totalorder %s984_s27, %s984_s27 }
  0x38   :  { %1102 = vmatpush3.bf16.msra.mxu1 %v1248_v3  ;;  %1081 = vmatprep.subr.bf16.mxu0 %v1249_v4  ;;  %v1256_v11 = vld [vmem:[#allocation5 + $0xa8] sm:$0xff]   ;;  %v1257_v12 = vld [vmem:[#allocation5 + $0x60] sm:$0xff]   ;;  %v1261_v16 = vld [vmem:[#allocation5 + $0x58] sm:$0xff]  }
  0x39   :  { %1103 = vmatprep.subr.bf16.mxu1 %v1250_v5  ;;  %v1258_v13 = vld [vmem:[#allocation5 + $0xe0] sm:$0xff]   ;;  %v1262_v17 = vld [vmem:[#allocation5 + $0xd8] sm:$0xff]   ;;  %v1265_v20 = vld [vmem:[#allocation5 + $0x50] sm:$0xff]  }
  0x3a   :  { %v1259_v14 = vld [vmem:[#allocation5 + $0x20] sm:$0xff]   ;;  %v1263_v18 = vld [vmem:[#allocation5 + $0x18] sm:$0xff]   ;;  %v1266_v21 = vld [vmem:[#allocation5 + $0xd0] sm:$0xff]  }
  0x3b   :  { %1082 = vmatpush3.bf16.msra.mxu0 %v1251_v6  ;;  %v1260_v15 = vld [vmem:[#allocation5 + $0xa0] sm:$0xff]   ;;  %v1264_v19 = vld [vmem:[#allocation5 + $0x98] sm:$0xff]   ;;  %v1267_v22 = vld [vmem:[#allocation5 + $0x10] sm:$0xff]  }
  0x3c   :  { %1104 = vmatpush3.bf16.msra.mxu1 %v1252_v7  ;;  %1083 = vmatprep.subr.bf16.mxu0 %v1253_v8  ;;  %v1268_v23 = vld [vmem:[#allocation5 + $0x90] sm:$0xff]   ;;  %v1269_v24 = vld [vmem:[#allocation5 + $0x48] sm:$0xff]   ;;  %v1273_v28 = vld [vmem:[#allocation5 + $0x40] sm:$0xff]  }
  0x3d   :  { %1105 = vmatprep.subr.bf16.mxu1 %v1254_v9  ;;  %v1270_v25 = vld [vmem:[#allocation5 + $0xc8] sm:$0xff]   ;;  %v1274_v29 = vld [vmem:[#allocation5 + $0xc0] sm:$0xff]   ;;  %v1282_v35 = vld [vmem:[#allocation2 + $0xc] ss:$28 sps:$4 sm:$0xff]  }
  0x3e   :  { %v1271_v26 = vld [vmem:[#allocation5 + $0x8] sm:$0xff]   ;;  %v1275_v30 = vld [vmem:[#allocation5] sm:$0xff]   ;;  %v1283_v37 = vld [vmem:[#allocation5 + $0x178] sm:$0xff]   ;;  %655 = vmatprep.mubr.bf16.mxu1 %v1282_v35 }
  0x3f   :  { %1084 = vmatpush3.bf16.msra.mxu0 %v1255_v10  ;;  %v1272_v27 = vld [vmem:[#allocation5 + $0x88] sm:$0xff]   ;;  %v1276_v31 = vld [vmem:[#allocation5 + $0x80] sm:$0xff]   ;;  %v1284_v38 = vld [vmem:[#allocation5 + $0x138] sm:$0xff]  }
  0x40   :  { %1106 = vmatpush3.bf16.msra.mxu1 %v1256_v11  ;;  %1085 = vmatprep.subr.bf16.mxu0 %v1257_v12  ;;  %v1277_v32 = vld [vmem:[#allocation2] ss:$28 sps:$4 sm:$0xff]   ;;  %v1280_v34 = vld [vmem:[#allocation2 + $0x8] ss:$28 sps:$4 sm:$0xff]   ;;  %v1285_v39 = vld [vmem:[#allocation5 + $0x1b8] sm:$0xff]  }
  0x41   :  { %1107 = vmatprep.subr.bf16.mxu1 %v1258_v13  ;;  %v1279_v33 = vld [vmem:[#allocation2 + $0x4] ss:$28 sps:$4 sm:$0xff]   ;;  %v1286_v40 = vld [vmem:[#allocation5 + $0x170] sm:$0xff]   ;;  %v1292_v46 = vld [vmem:[#allocation5 + $0x160] sm:$0xff]  }
  0x42   :  { %614 = vmatprep.mubr.bf16.mxu0 %v1279_v33  ;;  %v1287_v41 = vld [vmem:[#allocation5 + $0x130] sm:$0xff]   ;;  %v1289_v43 = vld [vmem:[#allocation5 + $0x168] sm:$0xff]   ;;  %v1293_v47 = vld [vmem:[#allocation5 + $0x120] sm:$0xff]  }
  0x43   :  { %1086 = vmatpush3.bf16.msra.mxu0 %v1259_v14  ;;  %v1288_v42 = vld [vmem:[#allocation5 + $0x1b0] sm:$0xff]   ;;  %v1290_v44 = vld [vmem:[#allocation5 + $0x128] sm:$0xff]   ;;  %v1294_v48 = vld [vmem:[#allocation5 + $0x1a0] sm:$0xff]  }
  0x44   :  { %1108 = vmatpush3.bf16.msra.mxu1 %v1260_v15  ;;  %1087 = vmatprep.subr.bf16.mxu0 %v1261_v16  ;;  %v1291_v45 = vld [vmem:[#allocation5 + $0x1a8] sm:$0xff]   ;;  %v1295_v49 = vld [vmem:[#allocation5 + $0x158] sm:$0xff]   ;;  %v1298_v52 = vld [vmem:[#allocation5 + $0x150] sm:$0xff]  }
  0x45   :  { %1109 = vmatprep.subr.bf16.mxu1 %v1262_v17  ;;  %v1296_v50 = vld [vmem:[#allocation5 + $0x118] sm:$0xff]   ;;  %v1299_v53 = vld [vmem:[#allocation5 + $0x110] sm:$0xff]   ;;  %v1301_v55 = vld [vmem:[#allocation5 + $0x148] sm:$0xff]  }
  0x46   :  { %v1297_v51 = vld [vmem:[#allocation5 + $0x198] sm:$0xff]   ;;  %v1300_v54 = vld [vmem:[#allocation5 + $0x190] sm:$0xff]   ;;  %v1302_v56 = vld [vmem:[#allocation5 + $0x108] sm:$0xff]  }
  0x47   :  { %1088 = vmatpush3.bf16.msra.mxu0 %v1263_v18  ;;  %v1303_v57 = vld [vmem:[#allocation5 + $0x188] sm:$0xff]   ;;  %v1304_v58 = vld [vmem:[#allocation5 + $0x140] sm:$0xff]   ;;  %v1309_v59 = vld [vmem:[#allocation2 + $0x14] ss:$28 sps:$4 sm:$0xff]  }
  0x48   :  { %1110 = vmatpush3.bf16.msra.mxu1 %v1264_v19  ;;  %1089 = vmatprep.subr.bf16.mxu0 %v1265_v20  ;;  %v1305_v60 = vld [vmem:[#allocation5 + $0x100] sm:$0xff]   ;;  %v1307_v62 = vld [vmem:[#allocation2 + $0x10] ss:$28 sps:$4 sm:$0xff]   ;;  %v1313_v2 = vld [vmem:[#allocation7 + $0x28] sm:$0xff]  }
  0x49   :  { %1111 = vmatprep.subr.bf16.mxu1 %v1266_v21  ;;  %v1306_v61 = vld [vmem:[#allocation5 + $0x180] sm:$0xff]   ;;  %v1311_v0 = vld [vmem:[#allocation7 + $0x38] sm:$0xff]   ;;  %v1312_v1 = vld [vmem:[#allocation7 + $0x30] sm:$0xff]  }
  0x4a   :  { %v1310_v63 = vld [vmem:[#allocation2 + $0x18] ss:$28 sps:$4 sm:$0xff]   ;;  %v1316_v5 = vld [vmem:[#allocation7 + $0x10] sm:$0xff]   ;;  %v1317_v6 = vld [vmem:[#allocation7 + $0x8] sm:$0xff]  }
  0x4b   :  { %1090 = vmatpush3.bf16.msra.mxu0 %v1267_v22  ;;  %v1314_v3 = vld [vmem:[#allocation7 + $0x20] sm:$0xff]   ;;  %v1315_v4 = vld [vmem:[#allocation7 + $0x18] sm:$0xff]   ;;  %v1320_v9 = vld [vmem:[#allocation8 + $0x30] sm:$0xff]  }
  0x4c   :  { %1112 = vmatpush3.bf16.msra.mxu1 %v1268_v23  ;;  %1091 = vmatprep.subr.bf16.mxu0 %v1269_v24  ;;  %v1318_v7 = vld [vmem:[#allocation7] sm:$0xff]   ;;  %v1319_v8 = vld [vmem:[#allocation8 + $0x38] sm:$0xff]   ;;  %v1321_v10 = vld [vmem:[#allocation8 + $0x28] sm:$0xff]  }
  0x4d   :  { %1113 = vmatprep.subr.bf16.mxu1 %v1270_v25  ;;  %v1322_v11 = vld [vmem:[#allocation8 + $0x20] sm:$0xff]   ;;  %v1323_v12 = vld [vmem:[#allocation8 + $0x18] sm:$0xff]   ;;  %v997_v20 = vld [vmem:[%s1553_s2] ss:$0 sm:$0xff] }
  0x4f   :  { %1092 = vmatpush3.bf16.msra.mxu0 %v1271_v26 }
  0x50   :  { %1114 = vmatpush3.bf16.msra.mxu1 %v1272_v27  ;;  %1093 = vmatprep.subr.bf16.mxu0 %v1273_v28 }
  0x51   :  { %1115 = vmatprep.subr.bf16.mxu1 %v1274_v29 }
  0x53   :  { %1094 = vmatpush3.bf16.msra.mxu0 %v1275_v30 }
  0x54   :  { %1116 = vmatpush3.bf16.msra.mxu1 %v1276_v31  ;;  %1123 = vmatprep.subr.bf16.mxu0 %v1283_v37 }
  0x55   :  { %1172 = vmatprep.subr.bf16.mxu1 %v1443_v36 }
  0x56   :  { %615 = vmatmul.mubr.bf16.vlgmr.msra.gmra.mxu0 %v1277_v32 }
  0x57   :  { %656 = vmatmul.mubr.bf16.vlgmr.msra.gmra.mxu1 %v1280_v34  ;;  %1124 = vmatpush3.bf16.msra.mxu0 %v1284_v38 }
  0x58   :  { %1188 = vmatprep.mubr.msk.bf16.mxu1 %vm1444_vm0, %v1443_v36  ;;  %1173 = vmatpush3.bf16.msra.mxu1 %v1285_v39 }
  0x59   :  { %1125 = vmatprep.subr.bf16.mxu0 %v1286_v40  ;;  %1174 = vmatprep.subr.bf16.mxu1 %v1443_v36 }
  0x5a   :  { %696 = vmatprep.mubr.bf16.mxu0 %v1309_v59 }
  0x5b   :  { %1126 = vmatpush3.bf16.msra.mxu0 %v1287_v41 }
  0x5c   :  { %1175 = vmatpush3.bf16.msra.mxu1 %v1288_v42  ;;  %1127 = vmatprep.subr.bf16.mxu0 %v1289_v43 }
  0x5d   :  { %1176 = vmatprep.subr.bf16.mxu1 %v1443_v36 }
  0x5f   :  { %1128 = vmatpush3.bf16.msra.mxu0 %v1290_v44 }
  0x60   :  { %1177 = vmatpush3.bf16.msra.mxu1 %v1291_v45  ;;  %1129 = vmatprep.subr.bf16.mxu0 %v1292_v46 }
  0x61   :  { %1178 = vmatprep.subr.bf16.mxu1 %v1443_v36 }
  0x63   :  { %1130 = vmatpush3.bf16.msra.mxu0 %v1293_v47 }
  0x64   :  { %1179 = vmatpush3.bf16.msra.mxu1 %v1294_v48  ;;  %1131 = vmatprep.subr.bf16.mxu0 %v1295_v49  ;;  %v1324_v48 = vld [vmem:[#allocation8 + $0x10] sm:$0xff]   ;;  %v1325_v49 = vld [vmem:[#allocation8 + $0x8] sm:$0xff]  }
  0x65   :  { %1180 = vmatprep.subr.bf16.mxu1 %v1443_v36 }
  0x67   :  { %1132 = vmatpush3.bf16.msra.mxu0 %v1296_v50  ;;  %v1326_v50 = vld [vmem:[#allocation8] sm:$0xff]  }
  0x68   :  { %1181 = vmatpush3.bf16.msra.mxu1 %v1297_v51  ;;  %1133 = vmatprep.subr.bf16.mxu0 %v1298_v52  ;;  %v1061_v51 = vld [vmem:[%s1555_s4] ss:$0 sm:$0xff]  ;;  %s1407_s4 = scalar_lea.vmem %s984_s27, 256 }
  0x69   :  { %1182 = vmatprep.subr.bf16.mxu1 %v1443_v36  ;;  %p1408_p6 = scmp.ne.s32.totalorder %s984_s27, %s1407_s4  ;;  %p1413_p8 = scmp.lt.s32.totalorder %s1407_s4, %s1407_s4 }
  0x6b   :  { %1134 = vmatpush3.bf16.msra.mxu0 %v1299_v53  ;;  %p1414_p9 = por %p1413_p8, %p1412_p7 }
  0x6c   :  { %1183 = vmatpush3.bf16.msra.mxu1 %v1300_v54  ;;  %1135 = vmatprep.subr.bf16.mxu0 %v1301_v55 }
  0x6d   :  { %1184 = vmatprep.subr.bf16.mxu1 %v1443_v36  ;;  %p1415_p10 = pnand %p1414_p9, %p1408_p6 }
  0x6f   :  { %1136 = vmatpush3.bf16.msra.mxu0 %v1302_v56 }
  0x70   :  { %1185 = vmatpush3.bf16.msra.mxu1 %v1303_v57  ;;  %1137 = vmatprep.subr.bf16.mxu0 %v1304_v58 }
  0x71   :  { %1186 = vmatprep.subr.bf16.mxu1 %v1443_v36 }
  0x73   :  { %1138 = vmatpush3.bf16.msra.mxu0 %v1305_v60 }
  0x74   :  { %1187 = vmatpush3.bf16.msra.mxu1 %v1306_v61  ;;  %1192 = vmatprep.subr.bf16.mxu0 %v1443_v36 }
  0x75   :  { %1212 = vmatprep.subr.bf16.mxu1 %v1443_v36 }
  0x76   :  { %697 = vmatmul.mubr.bf16.vlgmr.msra.gmra.mxu0 %v1307_v62 }
  0x77   :  { %1189 = vmatmul.mubr.bf16.vlgmr.msra.gmra.mxu1 %v1310_v63  ;;  %1208 = vmatprep.mubr.msk.bf16.mxu0 %vm1444_vm0, %v1443_v36 }
  0x78   :  { %1228 = vmatprep.mubr.msk.bf16.mxu1 %vm1444_vm0, %v1443_v36  ;;  %1193 = vmatpush3.bf16.msra.mxu0 %v1311_v0 }
  0x79   :  { %1194 = vmatprep.subr.bf16.mxu0 %v1443_v36  ;;  %1213 = vmatpush3.bf16.msra.mxu1 %v1319_v8 }
  0x7a   :  { %1214 = vmatprep.subr.bf16.mxu1 %v1443_v36 }
  0x7c   :  { %1195 = vmatpush3.bf16.msra.mxu0 %v1312_v1 }
  0x7d   :  { %1196 = vmatprep.subr.bf16.mxu0 %v1443_v36  ;;  %1215 = vmatpush3.bf16.msra.mxu1 %v1320_v9 }
  0x7e   :  { %1216 = vmatprep.subr.bf16.mxu1 %v1443_v36 }
  0x80   :  { %1197 = vmatpush3.bf16.msra.mxu0 %v1313_v2 }
  0x81   :  { %1198 = vmatprep.subr.bf16.mxu0 %v1443_v36  ;;  %1217 = vmatpush3.bf16.msra.mxu1 %v1321_v10 }
  0x82   :  { %1218 = vmatprep.subr.bf16.mxu1 %v1443_v36 }
  0x84   :  { %1199 = vmatpush3.bf16.msra.mxu0 %v1314_v3 }
  0x85   :  { %1200 = vmatprep.subr.bf16.mxu0 %v1443_v36  ;;  %1219 = vmatpush3.bf16.msra.mxu1 %v1322_v11 }
  0x86   :  { %1220 = vmatprep.subr.bf16.mxu1 %v1443_v36 }
  0x88   :  { %1201 = vmatpush3.bf16.msra.mxu0 %v1315_v4 }
  0x89   :  { %1202 = vmatprep.subr.bf16.mxu0 %v1443_v36  ;;  %1221 = vmatpush3.bf16.msra.mxu1 %v1323_v12 }
  0x8a   :  { %1222 = vmatprep.subr.bf16.mxu1 %v1443_v36 }
  0x8c   :  { %1203 = vmatpush3.bf16.msra.mxu0 %v1316_v5 }
  0x8d   :  { %1204 = vmatprep.subr.bf16.mxu0 %v1443_v36  ;;  %1223 = vmatpush3.bf16.msra.mxu1 %v1324_v48 }
  0x8e   :  { %1224 = vmatprep.subr.bf16.mxu1 %v1443_v36 }
  0x90   :  { %1205 = vmatpush3.bf16.msra.mxu0 %v1317_v6 }
  0x91   :  { %1206 = vmatprep.subr.bf16.mxu0 %v1443_v36  ;;  %1225 = vmatpush3.bf16.msra.mxu1 %v1325_v49 }
  0x92   :  { %1226 = vmatprep.subr.bf16.mxu1 %v1443_v36  ;;  %v1070_v36 = vld [vmem:[%s1557_s6] ss:$0 sm:$0xff] }
  0x94   :  { %1207 = vmatpush3.bf16.msra.mxu0 %v1318_v7 }
  0x95   :  { %1227 = vmatpush3.bf16.msra.mxu1 %v1326_v50 }
 0x116   :  { %v1095_v13 = vpop.f32.mrf.mxu0 }
 0x117   :  { %v1117_v14 = vpop.f32.mrf.mxu1 }
 0x118   :  { %v1096_v15 = vpop.f32.mrf.mxu0 }
 0x119   :  { %v1118_v16 = vpop.f32.mrf.mxu1  ;;  %v1097_v18 = vadd.f32 %v1096_v15, %v1095_v13 }
 0x11a   :  { %v1098_v17 = vpop.f32.mrf.mxu0  ;;  %v1119_v23 = vadd.f32 %v1118_v16, %v1117_v14 }
 0x11b   :  { %v1120_v19 = vpop.f32.mrf.mxu1  ;;  %v617_v22 = vadd.f32 %v1097_v18, %v997_v20 }
 0x11c   :  { %v1099_v21 = vpop.f32.mrf.mxu0 }
 0x11d   :  { %v1100_v24 = vadd.f32 %v1099_v21, %v1098_v17  ;;  %v1121_v25 = vpop.f32.mrf.mxu1  ;;  %v658_v29 = vadd.f32 %v1119_v23, %v617_v22 }
 0x11e   :  { %v1122_v31 = vadd.f32 %v1121_v25, %v1120_v19 }
 0x11f   :  { %v620_v30 = vadd.f32 %v1100_v24, %v997_v20 }
 0x121   :  { %v661_v39 = vadd.f32 %v1122_v31, %v620_v30 }
 0x136   :  { %v1139_v26 = vpop.f32.mrf.mxu0 }
 0x137   :  { %v739_v27 = vpop.f32.mrf.mxu1 }
 0x138   :  { %v1140_v28 = vpop.f32.mrf.mxu0 }
 0x139   :  { %v1141_v32 = vadd.f32 %v1140_v28, %v1139_v26  ;;  %v1190_v33 = vpop.f32.mrf.mxu1 }
 0x13a   :  { %v1142_v34 = vpop.f32.mrf.mxu0 }
 0x13b   :  { %v699_v35 = vadd.f32 %v1141_v32, %v658_v29  ;;  %v742_v37 = vpop.f32.mrf.mxu1 }
 0x13c   :  { %v1143_v38 = vpop.f32.mrf.mxu0 }
 0x13d   :  { %v1144_v40 = vadd.f32 %v1143_v38, %v1142_v34  ;;  %v1191_v41 = vpop.f32.mrf.mxu1  ;;  %v740_v42 = vadd.f32 %v739_v27, %v699_v35 }
 0x13f   :  { %v702_v43 = vadd.f32 %v1144_v40, %v661_v39  ;;  %v746_v45 = vmax.f32 %v740_v42, 0.0 }
 0x141   :  { %v743_v44 = vadd.f32 %v742_v37, %v702_v43 }
 0x143   :  { %v747_v46 = vmax.f32 %v743_v44, 0.0 }
 0x145   :  { %v748_v47 = vpack.c.bf16 %v747_v46, %v746_v45 }
 0x147   :  { %1209 = vmatmul.mubr.bf16.vlgmr.msra.gmra.mxu0 %v748_v47 }
 0x207   :  { %v854_v52 = vpop.f32.mrf.mxu0 }
 0x208   :  { %v855_v54 = vadd.f32 %v1061_v51, %v854_v52 }
 0x209   :  { %v1210_v53 = vpop.f32.mrf.mxu0 }
 0x20a   :  { %v861_v58 = vmax.f32 %v855_v54, 0.0 }
 0x20b   :  { %v857_v55 = vpop.f32.mrf.mxu0 }
 0x20c   :  { %v858_v56 = vadd.f32 %v1061_v51, %v857_v55 }
 0x20d   :  { %v1211_v57 = vpop.f32.mrf.mxu0 }
 0x20e   :  { %v862_v59 = vmax.f32 %v858_v56, 0.0 }
 0x210   :  { %v863_v60 = vpack.c.bf16 %v862_v59, %v861_v58 }
 0x212   :  { %1229 = vmatmul.mubr.bf16.vlgmr.msra.gmra.mxu1 %v863_v60 }
 0x2d2   :  { %v969_v61 = vpop.f32.mrf.mxu1 }
 0x2d3   :  { %v970_v62 = vadd.f32 %v1070_v36, %v969_v61 }
 0x2d4   :  { %v1230_v63 = vpop.f32.mrf.mxu1 }
 0x2d5   :  { %976 = vst [vmem:[#allocation10] sm:$0xff] %v970_v62 }
 0x2d6   :  { %v972_v0 = vpop.f32.mrf.mxu1 }
 0x2d7   :  { %v973_v1 = vadd.f32 %v1070_v36, %v972_v0 }
 0x2d8   :  { %v1231_v2 = vpop.f32.mrf.mxu1 }
 0x2d9   :  { %977 = vst [vmem:[#allocation10 + $0x8] sm:$0xff] %v973_v1 }
 0x2da   :  { %1418 = shalt.err (!%p1415_p10)
}
 0x2db   :  { %s1446_s28 = smov 128   ;;  %s1447_s6 = smov 8  }
 0x2dc   :  { %989 = dma.vmem_to_hbm [thread:$0]  %s984_s27, 256, %s1558_s7, [#allocation4], %s1446_s28, %s1446_s28, %s1447_s6  }
 0x2dd   :  { %1433 = dma.done.wait [#allocation4], 256  }
 0x2de   :  { %1434 = vsyncadd [#allocation4], 4294967040 }
 0x2df   :  { %993 = vsyncpa [#allocation3], 1 }
 0x2e0   :  { %994 = vsyncpa [#allocation6], 1 }
 0x2e1   :  { %995 = vsyncpa [#allocation9], 1 }
 0x2e2   :  { %996 = vsyncpa [#allocation4], 1 }

</bundles_post_ra>
